<compile_context>
chip_gen: v7x
topology: tpu7x:2x2x1
jax: 0.10.0
libtpu: 0.0.40
codegen_flags: <defaults>
</compile_context>

<pallas_src>
import functools

import jax
import jax.numpy as jnp
from jax.experimental import pallas as pl
from jax.experimental.pallas import tpu as pltpu


def _round_up(x, m):
    return ((x + m - 1) // m) * m


def _vmem_capacity_bytes():
    """Physical VMEM per TensorCore; conservative fallback if query fails."""
    try:
        info = pltpu.get_tpu_info()
        cap = getattr(info, "vmem_capacity_bytes", None)
        if cap:
            return int(cap)
    except Exception:
        pass
    return 64 * 1024 * 1024  # v7x per-TC size; safe lower bound on v5e/v6e too


def _make_root_kernel(num_children, residual, nb):
    """Kernel for a fixed number of children, residual flag, batch-per-step."""

    def kernel(*refs):
        # refs: x_0..x_{k-1} (nb, Ci, TL), w_0..w_{k-1} (Cout, Ci),
        #       shift (Cout, 1) f32, out (nb, Cout, TL)
        x_refs = refs[:num_children]
        w_refs = refs[num_children:2 * num_children]
        shift_ref = refs[2 * num_children]
        o_ref = refs[2 * num_children + 1]

        shift = shift_ref[...]                       # (Cout, 1), lane-broadcast
        for n in range(nb):                          # nb is small and static
            # DLA Root has 2-3 children, so the add chain is at most a couple
            # of extra VPU passes on top of the MXU accumulation.
            acc = jnp.dot(w_refs[0][...], x_refs[0][n],
                          preferred_element_type=jnp.float32)
            for i in range(1, num_children):
                acc = acc + jnp.dot(w_refs[i][...], x_refs[i][n],
                                    preferred_element_type=jnp.float32)
            acc = acc + shift                        # BN shift
            if residual:
                acc = acc + x_refs[0][n].astype(jnp.float32)
            o_ref[n] = jnp.maximum(acc, 0.0).astype(o_ref.dtype)

    return kernel


def _choose_tiling(N, L, cin, cout, in_bytes, vmem_cap, *, max_spatial_tile=8192):
    """Pick (nb, tl): images per step and lane-aligned spatial tile."""
    Lr = _round_up(L, 128)                     # upper bound of one (ragged) tile
    budget = int(vmem_cap * 0.45)              # headroom for compiler scratch
    w_bytes = cout * cin * in_bytes + cout * 4 # resident weight + shift blocks

    def footprint(nb, tl):
        blocks = 2 * nb * tl * (cin + cout) * in_bytes   # double-buffered in/out
        acc = nb * cout * tl * 4                         # f32 accumulator/temps
        return blocks + acc + w_bytes

    # Largest 128-multiple tile that fits the budget with nb = 1.
    per_lane = 2 * (cin + cout) * in_bytes + cout * 4
    tl_fit = max(0, budget - w_bytes) // max(1, per_lane)
    tl_fit = max(128, (tl_fit // 128) * 128)
    tl_cap = min(tl_fit, max_spatial_tile, Lr)
    tl_cap = max(128, (tl_cap // 128) * 128)

    # Balanced split of the spatial axis (wasted lanes < 128 per tile).
    nt = pl.cdiv(Lr, tl_cap)
    tl = _round_up(pl.cdiv(Lr, nt), 128)
    nt = pl.cdiv(L, tl)

    # Keep >= 2 grid steps when possible (v7x has 2 TensorCores to feed).
    if N * nt < 2 and Lr > 128:
        tl = _round_up(pl.cdiv(Lr, 2), 128)
        nt = pl.cdiv(L, tl)

    # Tiny spatial extents: batch several images per step to amortize the
    # ~0.35us per-grid-step overhead, as long as it still fits VMEM and
    # leaves >= 2 grid steps.
    nb = 1
    if nt == 1 and tl <= 1024:
        while (nb * 2 <= N
               and pl.cdiv(N, nb * 2) * nt >= 2
               and footprint(nb * 2, tl) <= budget):
            nb *= 2

    return nb, tl


def root_forward(children, conv_weight, bn_gamma, bn_beta, bn_mean, bn_var,
                 *, residual, eps=1e-5, max_spatial_tile=8192):
    """Pallas implementation of Root.forward (kernel_size == 1 only).

    children   : tuple of NCHW arrays (logically concatenated along channels)
    conv_weight: (Cout, Cin, 1, 1)  -- 1x1 conv, bias=False
    bn_*       : (Cout,) BatchNorm params / running stats
    """
    children = tuple(children)
    num_children = len(children)
    N, _, H, W = children[0].shape
    child_channels = [int(c.shape[1]) for c in children]
    cin = sum(child_channels)
    cout = conv_weight.shape[0]
    assert conv_weight.shape == (cout, cin, 1, 1), "only kernel_size=1 supported"
    if residual:
        assert child_channels[0] == cout, "residual requires children[0] to have Cout channels"

    dtype = children[0].dtype
    L = H * W
    in_bytes = jnp.dtype(dtype).itemsize

    vmem_cap = _vmem_capacity_bytes()
    nb, tl = _choose_tiling(N, L, cin, cout, in_bytes, vmem_cap,
                            max_spatial_tile=max_spatial_tile)

    # Fuse BN (inference) scale into the conv weight; keep only the shift.
    inv_std = jax.lax.rsqrt(bn_var.astype(jnp.float32) + eps)
    scale = bn_gamma.astype(jnp.float32) * inv_std                    # (Cout,)
    shift = (bn_beta.astype(jnp.float32)
             - bn_mean.astype(jnp.float32) * scale).reshape(cout, 1)  # (Cout, 1)
    w_fused = conv_weight.reshape(cout, cin).astype(jnp.float32) * scale[:, None]

    # Match weight dtype to activation dtype (bf16 -> native MXU path on
    # v5e/v6e); keep f32 weights for f32 activations. Accumulation is f32.
    w_dtype = dtype if jnp.dtype(dtype) in (jnp.dtype(jnp.bfloat16),
                                            jnp.dtype(jnp.float32)) else jnp.float32

    # Split weight per child along Cin; children NCHW -> (N, Ci, L) (free reshape,
    # NO padding copies -- the last spatial block is ragged and masked).
    x_parts, w_parts = [], []
    off = 0
    for c, ci in zip(children, child_channels):
        w_parts.append(w_fused[:, off:off + ci].astype(w_dtype))
        x_parts.append(c.reshape(N, ci, L))
        off += ci

    grid = (pl.cdiv(N, nb), pl.cdiv(L, tl))
    in_specs = (
        [pl.BlockSpec((nb, ci, tl), lambda n, l: (n, 0, l))
         for ci in child_channels]
        + [pl.BlockSpec((cout, ci), lambda n, l: (0, 0))
           for ci in child_channels]
        + [pl.BlockSpec((cout, 1), lambda n, l: (0, 0))]
    )
    out_spec = pl.BlockSpec((nb, cout, tl), lambda n, l: (n, 0, l))

    out = pl.pallas_call(
        _make_root_kernel(num_children, residual, nb),
        out_shape=jax.ShapeDtypeStruct((N, cout, L), dtype),
        grid_spec=pltpu.PrefetchScalarGridSpec(
            num_scalar_prefetch=0,
            grid=grid,
            in_specs=in_specs,
            out_specs=out_spec,
        ),
        compiler_params=pltpu.CompilerParams(
            dimension_semantics=("parallel", "parallel"),
            vmem_limit_bytes=int(vmem_cap * 0.75)),
    )(*x_parts, *w_parts, shift)

    return out.reshape(N, cout, H, W)


def _reference(children, conv_weight, bn_gamma, bn_beta, bn_mean, bn_var,
               *, residual, eps=1e-5):
    x = jnp.concatenate(children, axis=1)
    w = conv_weight.reshape(conv_weight.shape[0], conv_weight.shape[1])
    y = jnp.einsum("nchw,oc->nohw", x, w)
    inv_std = 1.0 / jnp.sqrt(bn_var + eps)
    y = (y - bn_mean[None, :, None, None]) * inv_std[None, :, None, None]
    y = y * bn_gamma[None, :, None, None] + bn_beta[None, :, None, None]
    if residual:
        y = y + children[0]
    return jnp.maximum(y, 0.0)


if __name__ == "__main__":
    # Two children of 8 channels each -> in_channels=16, out_channels=8,
    # residual=True (children[0] has Cout channels).
    key = jax.random.PRNGKey(0)
    k1, k2, k3, k4, k5, k6, k7 = jax.random.split(key, 7)

    N, H, W = 2, 16, 16
    C0, C1 = 8, 8
    Cin, Cout = C0 + C1, 8
    residual = True

    child0 = jax.random.normal(k1, (N, C0, H, W), dtype=jnp.float32)
    child1 = jax.random.normal(k2, (N, C1, H, W), dtype=jnp.float32)

    conv_weight = 0.1 * jax.random.normal(k3, (Cout, Cin, 1, 1), dtype=jnp.float32)
    bn_gamma = 1.0 + 0.05 * jax.random.normal(k4, (Cout,), dtype=jnp.float32)
    bn_beta = 0.05 * jax.random.normal(k5, (Cout,), dtype=jnp.float32)
    bn_mean = 0.1 * jax.random.normal(k6, (Cout,), dtype=jnp.float32)
    bn_var = jnp.abs(1.0 + 0.1 * jax.random.normal(k7, (Cout,), dtype=jnp.float32))

    fwd = jax.jit(functools.partial(root_forward, residual=residual))
    out = fwd((child0, child1), conv_weight, bn_gamma, bn_beta, bn_mean, bn_var)
    out = jax.block_until_ready(out)

    ref = _reference((child0, child1), conv_weight, bn_gamma, bn_beta, bn_mean,
                     bn_var, residual=residual)
    assert out.shape == (N, Cout, H, W)
    assert jnp.allclose(out, ref, atol=1e-4, rtol=1e-3), float(jnp.max(jnp.abs(out - ref)))

    print("KERNEL_OK")
</pallas_src>

<mosaic_0001>
module attributes {stable_mosaic.version = 11 : i64} {
  func.func @kernel(%arg0: i32, %arg1: i32, %arg2: memref<1x8x256xf32, #tpu.memory_space<vmem>>, %arg3: memref<1x8x256xf32, #tpu.memory_space<vmem>>, %arg4: memref<8x8xf32, #tpu.memory_space<vmem>>, %arg5: memref<8x8xf32, #tpu.memory_space<vmem>>, %arg6: memref<8x1xf32, #tpu.memory_space<vmem>>, %arg7: memref<1x8x256xf32, #tpu.memory_space<vmem>>) attributes {dimension_semantics = [#tpu.dimension_semantics<parallel>, #tpu.dimension_semantics<parallel>], iteration_bounds = array<i64: 2, 1>, scalar_prefetch = 0 : i64, scratch_operands = 0 : i64, tpu.core_type = #tpu.core_type<tc>, window_params = [{transform_indices = @transform_0, window_bounds = array<i64: 1, 8, 256>}, {transform_indices = @transform_1, window_bounds = array<i64: 1, 8, 256>}, {pipeline_mode = #tpu.pipeline_mode<synchronous>, transform_indices = @transform_2, window_bounds = array<i64: 8, 8>}, {pipeline_mode = #tpu.pipeline_mode<synchronous>, transform_indices = @transform_3, window_bounds = array<i64: 8, 8>}, {pipeline_mode = #tpu.pipeline_mode<synchronous>, transform_indices = @transform_4, window_bounds = array<i64: 8, 1>}, {transform_indices = @transform_5, window_bounds = array<i64: 1, 8, 256>}]} {
    %c0 = arith.constant 0 : index
    %c0_0 = arith.constant 0 : index
    %0 = vector.load %arg6[%c0, %c0_0] : memref<8x1xf32, #tpu.memory_space<vmem>>, vector<8x1xf32>
    %c0_1 = arith.constant 0 : index
    %c0_2 = arith.constant 0 : index
    %1 = vector.load %arg4[%c0_1, %c0_2] : memref<8x8xf32, #tpu.memory_space<vmem>>, vector<8x8xf32>
    %c0_3 = arith.constant 0 : index
    %c0_4 = arith.constant 0 : index
    %c0_5 = arith.constant 0 : index
    %2 = vector.load %arg2[%c0_3, %c0_4, %c0_5] : memref<1x8x256xf32, #tpu.memory_space<vmem>>, vector<1x8x256xf32>
    %3 = vector.shape_cast %2 : vector<1x8x256xf32> to vector<8x256xf32>
    %cst = arith.constant dense<0.000000e+00> : vector<8x256xf32>
    %4 = tpu.matmul %1, %3, %cst {dimension_numbers = #tpu.dot_dimension_numbers<[1], [0], [0], [1], [0, 0, 1, 1], [], []>} : vector<8x8xf32>, vector<8x256xf32>, vector<8x256xf32> -> vector<8x256xf32>
    %c0_6 = arith.constant 0 : index
    %c0_7 = arith.constant 0 : index
    %5 = vector.load %arg5[%c0_6, %c0_7] : memref<8x8xf32, #tpu.memory_space<vmem>>, vector<8x8xf32>
    %c0_8 = arith.constant 0 : index
    %c0_9 = arith.constant 0 : index
    %c0_10 = arith.constant 0 : index
    %6 = vector.load %arg3[%c0_8, %c0_9, %c0_10] : memref<1x8x256xf32, #tpu.memory_space<vmem>>, vector<1x8x256xf32>
    %7 = vector.shape_cast %6 : vector<1x8x256xf32> to vector<8x256xf32>
    %cst_11 = arith.constant dense<0.000000e+00> : vector<8x256xf32>
    %8 = tpu.matmul %5, %7, %cst_11 {dimension_numbers = #tpu.dot_dimension_numbers<[1], [0], [0], [1], [0, 0, 1, 1], [], []>} : vector<8x8xf32>, vector<8x256xf32>, vector<8x256xf32> -> vector<8x256xf32>
    %9 = arith.addf %4, %8 : vector<8x256xf32>
    %10 = vector.broadcast %0 : vector<8x1xf32> to vector<8x256xf32>
    %11 = arith.addf %9, %10 : vector<8x256xf32>
    %c0_12 = arith.constant 0 : index
    %c0_13 = arith.constant 0 : index
    %c0_14 = arith.constant 0 : index
    %12 = vector.load %arg2[%c0_12, %c0_13, %c0_14] : memref<1x8x256xf32, #tpu.memory_space<vmem>>, vector<1x8x256xf32>
    %13 = vector.shape_cast %12 : vector<1x8x256xf32> to vector<8x256xf32>
    %14 = arith.addf %11, %13 : vector<8x256xf32>
    %cst_15 = arith.constant 0.000000e+00 : f32
    %15 = vector.broadcast %cst_15 : f32 to vector<8x256xf32>
    %16 = arith.maximumf %14, %15 : vector<8x256xf32>
    %c0_16 = arith.constant 0 : index
    %c0_17 = arith.constant 0 : index
    %c0_18 = arith.constant 0 : index
    %17 = vector.load %arg7[%c0_16, %c0_17, %c0_18] : memref<1x8x256xf32, #tpu.memory_space<vmem>>, vector<1x8x256xf32>
    %18 = vector.shape_cast %17 : vector<1x8x256xf32> to vector<8x256xf32>
    %19 = vector.shape_cast %16 : vector<8x256xf32> to vector<1x8x256xf32>
    tpu.vector_store %arg7[%c0_16, %c0_17, %c0_18], %19 {strides = array<i32>} : memref<1x8x256xf32, #tpu.memory_space<vmem>>, vector<1x8x256xf32>,
    return
  }
  func.func @transform_0(%arg0: i32, %arg1: i32) -> (i32, i32, i32) {
    %c0_i32 = arith.constant 0 : i32
    %c0_i32_0 = arith.constant 0 : i32
    return %arg0, %c0_i32, %arg1 : i32, i32, i32
  }
  func.func @transform_1(%arg0: i32, %arg1: i32) -> (i32, i32, i32) {
    %c0_i32 = arith.constant 0 : i32
    %c0_i32_0 = arith.constant 0 : i32
    return %arg0, %c0_i32, %arg1 : i32, i32, i32
  }
  func.func @transform_2(%arg0: i32, %arg1: i32) -> (i32, i32) {
    %c0_i32 = arith.constant 0 : i32
    %c0_i32_0 = arith.constant 0 : i32
    %c0_i32_1 = arith.constant 0 : i32
    return %c0_i32, %c0_i32_0 : i32, i32
  }
  func.func @transform_3(%arg0: i32, %arg1: i32) -> (i32, i32) {
    %c0_i32 = arith.constant 0 : i32
    %c0_i32_0 = arith.constant 0 : i32
    %c0_i32_1 = arith.constant 0 : i32
    return %c0_i32, %c0_i32_0 : i32, i32
  }
  func.func @transform_4(%arg0: i32, %arg1: i32) -> (i32, i32) {
    %c0_i32 = arith.constant 0 : i32
    %c0_i32_0 = arith.constant 0 : i32
    %c0_i32_1 = arith.constant 0 : i32
    return %c0_i32, %c0_i32_0 : i32, i32
  }
  func.func @transform_5(%arg0: i32, %arg1: i32) -> (i32, i32, i32) {
    %c0_i32 = arith.constant 0 : i32
    %c0_i32_0 = arith.constant 0 : i32
    return %arg0, %c0_i32, %arg1 : i32, i32, i32
  }
}

</mosaic_0001>

<bundles_post_ra>
// kernel: root_forward.1
= control target key start
LH: loop header
LB: loop body
LE: loop exit
PB: predicated region body
PF: predicated region fallthrough
CT: control target
= control target key end

     0   :  { %s677_s18 = smov 0   ;;  %s679_s19 = smov 0   ;;  %s722_s0 = inlined_call_operand.vmem [shape: f32[2,8,256], index: 0, kind: input, shape index: {}]   ;;  %s723_s1 = inlined_call_operand.vmem [shape: f32[2,8,256], index: 1, kind: input, shape index: {}]   ;;  %s724_s2 = inlined_call_operand.vmem [shape: f32[8,8], index: 2, kind: input, shape index: {}]   ;;  %s725_s3 = inlined_call_operand.vmem [shape: f32[8,8], index: 3, kind: input, shape index: {}]   ;;  %s726_s4 = inlined_call_operand.vmem [shape: f32[8,1], index: 4, kind: input, shape index: {}]   ;;  %s727_s5 = inlined_call_operand.vmem [shape: f32[2,8,256], index: 5, kind: output, shape index: {}]  }
   0x1   :  { %s681_s20 = smov 0  }
   0x2 LB: > { %s27_s21 = sadd.s32 1, %s639_s19  ;;  %p578_p0 = scmp.ge.s32.totalorder %s643_s20, 1  ;;  %s643_s20 = sphi %s681_s20, %s15_s20   ;;  %s639_s19 = sphi %s679_s19, %s729_s19   ;;  %s635_s18 = sphi %s677_s18, %s728_s18  }
   0x3   : > { %p29_p1 = scmp.ge.s32.totalorder %s27_s21, 2  ;;  %p225_p2 = scmp.lt.s32.totalorder %s643_s20, 3 }
   0x5   : > { %s731_s21 = smov (%p29_p1, %s27_s21), 0  ;;  %p226_p3 = pnand %p578_p0, %p225_p2 }
   0x6   : > { %p271_p4 = scmp.lt.s32.totalorder (!%p226_p3), %s635_s18, 1  ;;  %v645_v0 = vmov (!%p226_p3), 0.0   ;;  %v300_v1 = vld [vmem:[%s726_s4] sm:$0xff] (!%p226_p3)  ;;  %v646_v2 = vmov (!%p226_p3), 0   ;;  %vm307_vm0 = vcmask (!%p226_p3), 64512  }
   0x7   : > { %229 = sbr.rel (%p226_p3) target bundleno = 243 (0xf3), region = 40  ;;  %375 = vmatprep.mubr.f32.mxu1 (!%p226_p3), %v645_v0  ;;  %449 = vmatprep.mubr.f32.mxu0 (!%p226_p3), %v645_v0  ;;  %v304_v5 = vld [vmem:[%s725_s3] sm:$0xff] (!%p226_p3) }
   0x8   : > { %620 = vset.pattern.permute.xlu0 (!%p226_p3), %v646_v2  ;;  %v301_v8 = vld [vmem:[%s724_s2] sm:$0xff] (!%p226_p3) }
   0x9   : > { %458 = vperm.xlu0 (!%p226_p3), %620, %v300_v1  }
   0xe   : > { %s733_s18 = smov (!%p271_p4, %s635_s18), 1 }
   0xf   : > { %s589_s24 = sshll.u32 %s733_s18, 4 }
  0x10   : > { %s288_s27 = scalar_lea.vmem %s723_s1, %s589_s24  ;;  %s278_s30 = scalar_lea.vmem %s722_s0, %s589_s24 }
  0x11   : > { %v306_v3 = vld [vmem:[%s288_s27 + $0x8] sm:$0xff]  ;;  %v305_v4 = vld [vmem:[%s288_s27] sm:$0xff]  ;;  %s298_s12 = scalar_lea.vmem %s727_s5, %s589_s24 }
  0x12   : > { %311 = vmatprep.subr.mxu1 %v306_v3  ;;  %v303_v6 = vld [vmem:[%s278_s30 + $0x8] sm:$0xff]  ;;  %v302_v7 = vld [vmem:[%s278_s30] sm:$0xff] }
  0x13   : > { %385 = vmatprep.subr.mxu0 %v303_v6  ;;  %312 = vmatpush1.msra.mxu1 %v305_v4 }
  0x14   : > { %386 = vmatpush1.msra.mxu0 %v302_v7  ;;  %585 = vmatmul.mubr.msk.f32.vlgmr.msra.gmra.mrb[0].mxu1 %vm307_vm0, %v304_v5 }
  0x15   : > { %586 = vmatmul.mubr.msk.f32.vlgmr.msra.gmra.mrb[0].mxu0 %vm307_vm0, %v301_v8 }
  0x88   : > { %v459_v10 = vpop.permute.xlu0 %458 }
  0xe7   : > { %v377_v9 = vpop.f32.mrb[0].mxu1 }
  0xe8   : > { %v451_v11 = vpop.f32.mrb[0].mxu0  ;;  %v379_v12 = vpop.f32.mrb[1].mxu1 }
  0xe9   : > { %v452_v13 = vadd.f32 %v451_v11, %v377_v9  ;;  %v453_v14 = vpop.f32.mrb[1].mxu0 }
  0xea   : > { %v454_v15 = vadd.f32 %v453_v14, %v379_v12 }
  0xeb   : > { %v461_v16 = vadd.f32 %v459_v10, %v452_v13 }
  0xec   : > { %v462_v17 = vadd.f32 %v459_v10, %v454_v15 }
  0xed   : > { %v463_v18 = vadd.f32 %v461_v16, %v302_v7 }
  0xee   : > { %v464_v19 = vadd.f32 %v462_v17, %v303_v6 }
  0xef   : > { %v465_v20 = vmax.f32 %v463_v18, 0.0 }
  0xf0   : > { %v466_v21 = vmax.f32 %v464_v19, 0.0 }
  0xf1   : > { %467 = vst [vmem:[%s298_s12] sm:$0xff] %v465_v20 }
  0xf2   : > { %468 = vst [vmem:[%s298_s12 + $0x8] sm:$0xff] %v466_v21 }
  0xf3 PF: > { %s15_s20 = sadd.s32 1, %s643_s20   ;;  %s728_s18 = smov %s639_s19 }
  0xf4   : > { %p12_p5 = scmp.ge.s32.totalorder %s15_s20, 4   ;;  %s729_s19 = smov %s731_s21 }
  0xf6   :  { %14 = sbr.rel (!%p12_p5) target bundleno = 2 (0x2), region = 73 }

</bundles_post_ra>
